<compile_context>
chip_gen: v7x
topology: tpu7x:2x2x1
jax: 0.10.0
libtpu: 0.0.40
codegen_flags: <defaults>
</compile_context>

<pallas_src>
import functools

import jax
import jax.numpy as jnp
from jax.experimental import pallas as pl
from jax.experimental.pallas import tpu as pltpu

_LANE = 128
_MIB = 1024 * 1024


def _tpu_vmem_capacity_bytes():
    """Physical VMEM per TensorCore; conservative (v7x = 64 MiB) if the query fails."""
    try:
        return int(pltpu.get_tpu_info().vmem_capacity_bytes)
    except Exception:
        return 64 * _MIB


def _round_up(x, m):
    return x + (-x) % m


def prepare_weights(primals_2, primals_3, *, compute_dtype=None, pad_lanes=False):
    """One-time (init-time) weight preparation -- keep OUT of the per-forward hot path.

    * Pre-transposes to [K, H] / [H, N] so the kernel contracts (last, second-to-last):
      the MXU is fed directly, no per-grid-step transpose of grid-invariant tiles.
    * Casts to compute_dtype once (e.g. bf16): halves weight HBM->VMEM DMA bytes and
      resident-weight VMEM, removes per-step VPU casts of constant data.
    * Optional zero lane-padding of H / N to multiples of 128 (mathematically exact:
      padded hidden columns are relu(0)=0 and contribute nothing).  Off by default --
      for small H/N (repro: 64/32) the post-kernel slice costs more than the masked
      stores it would avoid.
    """
    H, K = primals_2.shape
    N, H2 = primals_3.shape
    assert H == H2, (primals_2.shape, primals_3.shape)
    if compute_dtype is None:
        compute_dtype = primals_2.dtype

    Hp = _round_up(H, _LANE) if pad_lanes else H
    Np = _round_up(N, _LANE) if pad_lanes else N

    w1t = jnp.transpose(primals_2)  # [K, H]
    w2t = jnp.transpose(primals_3)  # [H, N]
    if Hp != H:
        w1t = jnp.pad(w1t, ((0, 0), (0, Hp - H)))
        w2t = jnp.pad(w2t, ((0, Hp - H), (0, 0)))
    if Np != N:
        w2t = jnp.pad(w2t, ((0, 0), (0, Np - N)))
    w1t = w1t.astype(compute_dtype)
    w2t = w2t.astype(compute_dtype)
    return {"w1t": w1t, "w2t": w2t, "H": H, "N": N, "compute_dtype": compute_dtype}


def _mlp_kernel(x_ref, w1_ref, w2_ref, relu_ref, out_ref, *, compute_dtype):
    # x_ref   : [tm, K]   activation row tile
    # w1_ref  : [K, Hp]   pre-transposed / pre-cast weight 1 (grid-invariant, resident)
    # w2_ref  : [Hp, Np]  pre-transposed / pre-cast weight 2 (grid-invariant, resident)
    # relu_ref: [tm, Hp]  saved activation
    # out_ref : [tm, Np]  second matmul output
    x = x_ref[...]
    if x.dtype != compute_dtype:
        x = x.astype(compute_dtype)  # only the per-call activation is cast in-kernel

    # mm = x @ w1.T  (weights already transposed at init -> plain MXU matmul, f32 acc)
    h = jnp.dot(x, w1_ref[...], preferred_element_type=jnp.float32)
    h = jnp.maximum(h, 0.0)  # relu on the VPU
    relu_ref[...] = h.astype(relu_ref.dtype)

    # mm_1 = relu @ w2.T
    y = jnp.dot(h.astype(compute_dtype), w2_ref[...], preferred_element_type=jnp.float32)
    out_ref[...] = y.astype(out_ref.dtype)


def repro_forward(primals_1, primals_2, primals_3, *, prepared=None,
                  compute_dtype=None, tm=None):
    """Mirrors Repro.forward. Returns (wait_tensor, primals_1, relu, permute_6)."""
    M, K = primals_1.shape
    if prepared is None:
        # Convenience path.  For production, call prepare_weights() once at init and pass
        # `prepared=` so the transpose/pad/cast (an extra full HBM pass over both weight
        # matrices) is not re-done every forward.
        prepared = prepare_weights(primals_2, primals_3, compute_dtype=compute_dtype)
    w1t, w2t = prepared["w1t"], prepared["w2t"]
    H, N = prepared["H"], prepared["N"]
    compute_dtype = prepared["compute_dtype"]
    Kw, Hp = w1t.shape
    Hp2, Np = w2t.shape
    assert K == Kw and Hp == Hp2

    out_dtype = primals_1.dtype
    # Saved relu activation follows the compute dtype (bf16 halves its writeback/VMEM;
    # it is re-read in bf16 for the second matmul anyway).  f32 path stays f32 (exact).
    relu_dtype = compute_dtype

    itemsize = lambda dt: jnp.dtype(dt).itemsize
    vmem_cap = _tpu_vmem_capacity_bytes()
    # ~75% of physical VMEM: 48 MiB on v7x (64 MiB part), 96 MiB on v5e/v6e (128 MiB).
    vmem_limit = min(int(vmem_cap * 3 // 4), 96 * _MIB)

    # Generation-aware row tile: v7x (64 MiB VMEM, 2 TCs/chip) -> cap tm at 256 so the
    # "parallel" M axis has >= 2 grid steps and per-step tiles stay small; v5e/v6e
    # (single TC, 128 MiB) -> larger tiles, fewer ~0.35us grid-step overheads.
    if tm is None:
        cap = 256 if vmem_cap <= 64 * _MIB else 1024
        if M <= cap:
            tm = M
        else:
            tm = next((c for c in (1024, 512, 256, 128, 64, 32, 16, 8)
                       if c <= cap and M % c == 0), M)
    assert M % tm == 0, (M, tm)
    grid = (M // tm,)

    # VMEM footprint guard (worst case: everything double-buffered).
    est_vmem = (2 * (K * Hp + Hp * Np) * itemsize(compute_dtype)
                + 2 * tm * K * itemsize(primals_1.dtype)
                + 2 * tm * Hp * itemsize(relu_dtype)
                + 2 * tm * Np * itemsize(out_dtype))
    if est_vmem > vmem_limit:
        # TODO(synk): for production K/H/N, add an "arbitrary" contraction grid axis with
        # an f32 VMEM accumulator (pl.when init at k==0, store at k==last) instead of
        # fully-resident weights and full-K activation tiles.
        raise NotImplementedError(
            f"resident-weight kernel needs ~{est_vmem} B VMEM > limit {vmem_limit} B; "
            "K/H contraction tiling not implemented")

    cost = pl.CostEstimate(
        flops=2 * M * K * Hp + 2 * M * Hp * Np,
        transcendentals=0,
        bytes_accessed=(M * K * itemsize(primals_1.dtype)
                        + (K * Hp + Hp * Np) * itemsize(compute_dtype)
                        + M * Hp * itemsize(relu_dtype)
                        + M * Np * itemsize(out_dtype)),
    )

    kernel = functools.partial(_mlp_kernel, compute_dtype=compute_dtype)

    def run(single_buffer_weights):
        if single_buffer_weights:
            # Grid-invariant weights: constant (0,0) index map never re-DMAs, and
            # single-buffering halves their resident VMEM (decisive on v7x's 64 MiB).
            w_spec = lambda shape: pl.BlockSpec(shape, lambda i: (0, 0),
                                                pipeline_mode=pl.Buffered(1))
        else:
            w_spec = lambda shape: pl.BlockSpec(shape, lambda i: (0, 0))
        return pl.pallas_call(
            kernel,
            out_shape=(
                jax.ShapeDtypeStruct((M, Hp), relu_dtype),  # saved relu activation
                jax.ShapeDtypeStruct((M, Np), out_dtype),   # mm_1
            ),
            grid=grid,
            in_specs=[
                pl.BlockSpec((tm, K), lambda i: (i, 0)),    # activation row tile
                w_spec((K, Hp)),                            # w1^T (resident)
                w_spec((Hp, Np)),                           # w2^T (resident)
            ],
            out_specs=[
                pl.BlockSpec((tm, Hp), lambda i: (i, 0)),
                pl.BlockSpec((tm, Np), lambda i: (i, 0)),
            ],
            compiler_params=pltpu.CompilerParams(
                dimension_semantics=("parallel",),
                vmem_limit_bytes=vmem_limit,
            ),
            cost_estimate=cost,
        )(primals_1, w1t, w2t)

    try:
        relu_p, y_p = run(single_buffer_weights=True)
    except Exception:
        # pl.Buffered(1) unsupported by this jax/Mosaic build -> default 2-deep buffering.
        relu_p, y_p = run(single_buffer_weights=False)

    relu_out = relu_p if Hp == H else relu_p[:, :H]
    mm1_out = y_p if Np == N else y_p[:, :N]

    # TODO(synk): _c10d_functional.all_reduce('sum', tp group '1') is the identity on a
    # single device (wait_tensor == mm_1).  For real multi-device TP, fuse a per-tile
    # make_async_remote_copy ring reduce (barrier sem + collective_id) into the kernel
    # instead of a separate collective.
    wait_tensor = mm1_out

    # permute_6 = (primals_3.T).T == primals_3 (untouched original array).
    permute_6 = primals_3
    return wait_tensor, primals_1, relu_out, permute_6


if __name__ == "__main__":
    # Small shapes consistent with the 2-layer TP MLP shard: seq=16, in=32,
    # intermediate(shard)=64, out=32.  At this size the kernel is launch-overhead bound;
    # the tuning knobs above matter for production shapes.
    M, K, H, N = 16, 32, 64, 32

    key = jax.random.PRNGKey(0)
    k1, k2, k3 = jax.random.split(key, 3)
    primals_1 = jax.random.normal(k1, (M, K), dtype=jnp.float32)
    primals_2 = jax.random.normal(k2, (H, K), dtype=jnp.float32) * 0.1
    primals_3 = jax.random.normal(k3, (N, H), dtype=jnp.float32) * 0.1

    # f32 path (matches the torch graph's matmul numerics).
    outs = jax.block_until_ready(repro_forward(primals_1, primals_2, primals_3))

    relu_ref = jnp.maximum(primals_1 @ primals_2.T, 0.0)
    y_ref = relu_ref @ primals_3.T
    assert outs[0].shape == (M, N) and outs[2].shape == (M, H)
    assert jnp.allclose(outs[0], y_ref, atol=1e-4, rtol=1e-4)
    assert jnp.allclose(outs[2], relu_ref, atol=1e-4, rtol=1e-4)
    assert outs[1].shape == (M, K)
    assert outs[3].shape == (N, H)

    # Production configuration: prepare (transpose + cast to bf16) ONCE at init, then
    # reuse the prepared weights across forwards (f32 accumulation inside the kernel).
    prepared_bf16 = prepare_weights(primals_2, primals_3, compute_dtype=jnp.bfloat16)
    outs_bf16 = jax.block_until_ready(
        repro_forward(primals_1, primals_2, primals_3, prepared=prepared_bf16))
    assert jnp.allclose(outs_bf16[0], y_ref, atol=1e-1, rtol=1e-1)
    assert jnp.allclose(outs_bf16[2].astype(jnp.float32), relu_ref, atol=1e-1, rtol=1e-1)

    print("KERNEL_OK")
</pallas_src>

<mosaic_0001>
module attributes {stable_mosaic.version = 11 : i64} {
  func.func @_mlp_kernel(%arg0: i32, %arg1: memref<16x32xf32, #tpu.memory_space<vmem>>, %arg2: memref<32x64xf32, #tpu.memory_space<vmem>>, %arg3: memref<64x32xf32, #tpu.memory_space<vmem>>, %arg4: memref<16x64xf32, #tpu.memory_space<vmem>>, %arg5: memref<16x32xf32, #tpu.memory_space<vmem>>) attributes {dimension_semantics = [#tpu.dimension_semantics<parallel>], iteration_bounds = array<i64: 1>, scalar_prefetch = 0 : i64, scratch_operands = 0 : i64, tpu.core_type = #tpu.core_type<tc>, window_params = [{transform_indices = @transform_0, window_bounds = array<i64: 16, 32>}, {pipeline_mode = #tpu.pipeline_mode<synchronous>, transform_indices = @transform_1, window_bounds = array<i64: 32, 64>}, {pipeline_mode = #tpu.pipeline_mode<synchronous>, transform_indices = @transform_2, window_bounds = array<i64: 64, 32>}, {transform_indices = @transform_3, window_bounds = array<i64: 16, 64>}, {transform_indices = @transform_4, window_bounds = array<i64: 16, 32>}]} {
    %c0 = arith.constant 0 : index
    %c0_0 = arith.constant 0 : index
    %0 = vector.load %arg1[%c0, %c0_0] : memref<16x32xf32, #tpu.memory_space<vmem>>, vector<16x32xf32>
    %c0_1 = arith.constant 0 : index
    %c0_2 = arith.constant 0 : index
    %1 = vector.load %arg2[%c0_1, %c0_2] : memref<32x64xf32, #tpu.memory_space<vmem>>, vector<32x64xf32>
    %cst = arith.constant dense<0.000000e+00> : vector<16x64xf32>
    %2 = tpu.matmul %0, %1, %cst {dimension_numbers = #tpu.dot_dimension_numbers<[1], [0], [0], [1], [0, 0, 1, 1], [], []>} : vector<16x32xf32>, vector<32x64xf32>, vector<16x64xf32> -> vector<16x64xf32>
    %cst_3 = arith.constant 0.000000e+00 : f32
    %3 = vector.broadcast %cst_3 : f32 to vector<16x64xf32>
    %4 = arith.maximumf %2, %3 : vector<16x64xf32>
    %c0_4 = arith.constant 0 : index
    %c0_5 = arith.constant 0 : index
    %5 = vector.load %arg4[%c0_4, %c0_5] : memref<16x64xf32, #tpu.memory_space<vmem>>, vector<16x64xf32>
    tpu.vector_store %arg4[%c0_4, %c0_5], %4 {strides = array<i32>} : memref<16x64xf32, #tpu.memory_space<vmem>>, vector<16x64xf32>,
    %c0_6 = arith.constant 0 : index
    %c0_7 = arith.constant 0 : index
    %6 = vector.load %arg3[%c0_6, %c0_7] : memref<64x32xf32, #tpu.memory_space<vmem>>, vector<64x32xf32>
    %cst_8 = arith.constant dense<0.000000e+00> : vector<16x32xf32>
    %7 = tpu.matmul %4, %6, %cst_8 {dimension_numbers = #tpu.dot_dimension_numbers<[1], [0], [0], [1], [0, 0, 1, 1], [], []>} : vector<16x64xf32>, vector<64x32xf32>, vector<16x32xf32> -> vector<16x32xf32>
    %c0_9 = arith.constant 0 : index
    %c0_10 = arith.constant 0 : index
    %8 = vector.load %arg5[%c0_9, %c0_10] : memref<16x32xf32, #tpu.memory_space<vmem>>, vector<16x32xf32>
    tpu.vector_store %arg5[%c0_9, %c0_10], %7 {strides = array<i32>} : memref<16x32xf32, #tpu.memory_space<vmem>>, vector<16x32xf32>,
    return
  }
  func.func @transform_0(%arg0: i32) -> (i32, i32) {
    %c0_i32 = arith.constant 0 : i32
    %c0_i32_0 = arith.constant 0 : i32
    return %arg0, %c0_i32 : i32, i32
  }
  func.func @transform_1(%arg0: i32) -> (i32, i32) {
    %c0_i32 = arith.constant 0 : i32
    %c0_i32_0 = arith.constant 0 : i32
    %c0_i32_1 = arith.constant 0 : i32
    return %c0_i32, %c0_i32_0 : i32, i32
  }
  func.func @transform_2(%arg0: i32) -> (i32, i32) {
    %c0_i32 = arith.constant 0 : i32
    %c0_i32_0 = arith.constant 0 : i32
    %c0_i32_1 = arith.constant 0 : i32
    return %c0_i32, %c0_i32_0 : i32, i32
  }
  func.func @transform_3(%arg0: i32) -> (i32, i32) {
    %c0_i32 = arith.constant 0 : i32
    %c0_i32_0 = arith.constant 0 : i32
    return %arg0, %c0_i32 : i32, i32
  }
  func.func @transform_4(%arg0: i32) -> (i32, i32) {
    %c0_i32 = arith.constant 0 : i32
    %c0_i32_0 = arith.constant 0 : i32
    return %arg0, %c0_i32 : i32, i32
  }
}

module attributes {stable_mosaic.version = 11 : i64} {
  func.func @_mlp_kernel(%arg0: i32, %arg1: memref<16x32xf32, #tpu.memory_space<vmem>>, %arg2: memref<32x64xf32, #tpu.memory_space<vmem>>, %arg3: memref<64x32xf32, #tpu.memory_space<vmem>>, %arg4: memref<16x64xf32, #tpu.memory_space<vmem>>, %arg5: memref<16x32xf32, #tpu.memory_space<vmem>>) attributes {dimension_semantics = [#tpu.dimension_semantics<parallel>], iteration_bounds = array<i64: 1>, scalar_prefetch = 0 : i64, scratch_operands = 0 : i64, tpu.core_type = #tpu.core_type<tc>, window_params = [{transform_indices = @transform_0, window_bounds = array<i64: 16, 32>}, {pipeline_mode = #tpu.pipeline_mode<synchronous>, transform_indices = @transform_1, window_bounds = array<i64: 32, 64>}, {pipeline_mode = #tpu.pipeline_mode<synchronous>, transform_indices = @transform_2, window_bounds = array<i64: 64, 32>}, {transform_indices = @transform_3, window_bounds = array<i64: 16, 64>}, {transform_indices = @transform_4, window_bounds = array<i64: 16, 32>}]} {
    %c0 = arith.constant 0 : index
    %c0_0 = arith.constant 0 : index
    %0 = vector.load %arg1[%c0, %c0_0] : memref<16x32xf32, #tpu.memory_space<vmem>>, vector<16x32xf32>
    %c0_1 = arith.constant 0 : index
    %c0_2 = arith.constant 0 : index
    %1 = vector.load %arg2[%c0_1, %c0_2] : memref<32x64xf32, #tpu.memory_space<vmem>>, vector<32x64xf32>
    %cst = arith.constant dense<0.000000e+00> : vector<16x64xf32>
    %2 = tpu.matmul %0, %1, %cst {dimension_numbers = #tpu.dot_dimension_numbers<[1], [0], [0], [1], [0, 0, 1, 1], [], []>} : vector<16x32xf32>, vector<32x64xf32>, vector<16x64xf32> -> vector<16x64xf32>
    %cst_3 = arith.constant 0.000000e+00 : f32
    %3 = vector.broadcast %cst_3 : f32 to vector<16x64xf32>
    %4 = arith.maximumf %2, %3 : vector<16x64xf32>
    %c0_4 = arith.constant 0 : index
    %c0_5 = arith.constant 0 : index
    %5 = vector.load %arg4[%c0_4, %c0_5] : memref<16x64xf32, #tpu.memory_space<vmem>>, vector<16x64xf32>
    tpu.vector_store %arg4[%c0_4, %c0_5], %4 {strides = array<i32>} : memref<16x64xf32, #tpu.memory_space<vmem>>, vector<16x64xf32>,
    %c0_6 = arith.constant 0 : index
    %c0_7 = arith.constant 0 : index
    %6 = vector.load %arg3[%c0_6, %c0_7] : memref<64x32xf32, #tpu.memory_space<vmem>>, vector<64x32xf32>
    %cst_8 = arith.constant dense<0.000000e+00> : vector<16x32xf32>
    %7 = tpu.matmul %4, %6, %cst_8 {dimension_numbers = #tpu.dot_dimension_numbers<[1], [0], [0], [1], [0, 0, 1, 1], [], []>} : vector<16x64xf32>, vector<64x32xf32>, vector<16x32xf32> -> vector<16x32xf32>
    %c0_9 = arith.constant 0 : index
    %c0_10 = arith.constant 0 : index
    %8 = vector.load %arg5[%c0_9, %c0_10] : memref<16x32xf32, #tpu.memory_space<vmem>>, vector<16x32xf32>
    tpu.vector_store %arg5[%c0_9, %c0_10], %7 {strides = array<i32>} : memref<16x32xf32, #tpu.memory_space<vmem>>, vector<16x32xf32>,
    return
  }
  func.func @transform_0(%arg0: i32) -> (i32, i32) {
    %c0_i32 = arith.constant 0 : i32
    %c0_i32_0 = arith.constant 0 : i32
    return %arg0, %c0_i32 : i32, i32
  }
  func.func @transform_1(%arg0: i32) -> (i32, i32) {
    %c0_i32 = arith.constant 0 : i32
    %c0_i32_0 = arith.constant 0 : i32
    %c0_i32_1 = arith.constant 0 : i32
    return %c0_i32, %c0_i32_0 : i32, i32
  }
  func.func @transform_2(%arg0: i32) -> (i32, i32) {
    %c0_i32 = arith.constant 0 : i32
    %c0_i32_0 = arith.constant 0 : i32
    %c0_i32_1 = arith.constant 0 : i32
    return %c0_i32, %c0_i32_0 : i32, i32
  }
  func.func @transform_3(%arg0: i32) -> (i32, i32) {
    %c0_i32 = arith.constant 0 : i32
    %c0_i32_0 = arith.constant 0 : i32
    return %arg0, %c0_i32 : i32, i32
  }
  func.func @transform_4(%arg0: i32) -> (i32, i32) {
    %c0_i32 = arith.constant 0 : i32
    %c0_i32_0 = arith.constant 0 : i32
    return %arg0, %c0_i32 : i32, i32
  }
}

</mosaic_0001>

<bundles_post_ra>
// kernel: tpu_custom_call.1
= control target key start
LH: loop header
LB: loop body
LE: loop exit
PB: predicated region body
PF: predicated region fallthrough
CT: control target
= control target key end

     0   :  { %10 = vsyncpa [#allocation3], 0  ;;  %vm24_vm0 = vcmask 261120   ;;  %s459_s0 = inlined_call_operand.vmem [shape: f32[16,32], index: 0, kind: input, shape index: {}]   ;;  %s460_s1 = inlined_call_operand.vmem [shape: f32[32,64], index: 1, kind: input, shape index: {}]   ;;  %s461_s2 = inlined_call_operand.vmem [shape: f32[64,32], index: 2, kind: input, shape index: {}]   ;;  %s462_s3 = inlined_call_operand.hbm [shape: f32[16,64], index: 3, kind: output, shape index: {0}]   ;;  %s463_s4 = inlined_call_operand.hbm [shape: f32[16,32], index: 4, kind: output, shape index: {1}]  }
   0x1   :  { %v20_v0 = vld [vmem:[%s460_s1] sm:$0xff]  ;;  %v21_v1 = vld [vmem:[%s460_s1 + $0x8] sm:$0xff]  ;;  %v22_v2 = vld [vmem:[%s460_s1 + $0x10] sm:$0xff] }
   0x2   :  { %v284_v3 = vpack.c.bf16 %v21_v1, %v20_v0  ;;  %v23_v4 = vld [vmem:[%s460_s1 + $0x18] sm:$0xff]  ;;  %v18_v5 = vld [vmem:[%s459_s0] sm:$0xff]  ;;  %v112_v8 = vld [vmem:[%s461_s2 + $0x8] sm:$0xff] }
   0x3   :  { %v288_v6 = vpack.c.bf16 %v23_v4, %v22_v2  ;;  %262 = vmatprep.mubr.msk.f32.mxu0 %vm24_vm0, %v18_v5  ;;  %v111_v7 = vld [vmem:[%s461_s2] sm:$0xff]  ;;  %v113_v9 = vld [vmem:[%s461_s2 + $0x10] sm:$0xff]  ;;  %v114_v11 = vld [vmem:[%s461_s2 + $0x18] sm:$0xff] }
   0x4   :  { %285 = vmatprep.subr.bf16.mxu0 %v284_v3  ;;  %v292_v10 = vpack.c.bf16 %v112_v8, %v111_v7  ;;  %v296_v12 = vpack.c.bf16 %v114_v11, %v113_v9  ;;  %v115_v13 = vld [vmem:[%s461_s2 + $0x20] sm:$0xff]  ;;  %v116_v14 = vld [vmem:[%s461_s2 + $0x28] sm:$0xff] }
   0x5   :  { %287 = vmatpush3.bf16.msra.mxu0 %v284_v3 }
   0x6   :  { %11 = vsyncpa [#allocation5], 0  ;;  %289 = vmatprep.subr.bf16.mxu0 %v288_v6  ;;  %293 = vmatprep.subr.bf16.mxu1 %v292_v10  ;;  %v300_v15 = vpack.c.bf16 %v116_v14, %v115_v13  ;;  %v19_v16 = vld [vmem:[%s459_s0 + $0x8] sm:$0xff]  ;;  %v117_v17 = vld [vmem:[%s461_s2 + $0x30] sm:$0xff]  ;;  %vm108_vm1 = vcmask 523264   ;;  %s360_s0 = smov [#allocation2]  }
   0x7   :  { %295 = vmatpush3.bf16.msra.mxu1 %v292_v10  ;;  %v118_v18 = vld [vmem:[%s461_s2 + $0x38] sm:$0xff]  ;;  %s207_s16 = sshll.u32 %s360_s0, 4  ;;  %s208_s16 = int_to_ptr.vmem [resolvable:$true] %s207_s16 }
   0x8   :  { %297 = vmatprep.subr.bf16.mxu1 %v296_v12  ;;  %v304_v19 = vpack.c.bf16 %v118_v18, %v117_v17  ;;  %s312_s17 = scalar_lea.vmem %s208_s16, 256  ;;  %p317_p1 = scmp.lt.s32.totalorder %s208_s16, %s208_s16 }
   0x9   :  { %291 = vmatpush3.bf16.msra.mxu0 %v288_v6  ;;  %p313_p0 = scmp.ne.s32.totalorder %s208_s16, %s312_s17  ;;  %p318_p2 = scmp.lt.s32.totalorder %s312_s17, %s312_s17 }
   0xb   :  { %299 = vmatpush3.bf16.msra.mxu1 %v296_v12  ;;  %p319_p3 = por %p318_p2, %p317_p1 }
   0xc   :  { %263 = vmatmul.mubr.msk.f32.vlgmr.msra.gmra.mrb[0].mxu0 %vm24_vm0, %v19_v16  ;;  %301 = vmatprep.subr.bf16.mxu1 %v300_v15 }
   0xd   :  { %p320_p4 = pnand %p319_p3, %p313_p0 }
   0xf   :  { %303 = vmatpush3.bf16.msra.mxu1 %v300_v15 }
  0x10   :  { %305 = vmatprep.subr.bf16.mxu1 %v304_v19 }
  0x13   :  { %307 = vmatpush3.bf16.msra.mxu1 %v304_v19 }
  0xdf   :  { %v264_v20 = vpop.f32.mrb[0].mxu0 }
  0xe0   :  { %v107_v21 = vmax.f32 %v264_v20, 0.0  ;;  %v97_v22 = vpop.f32.mrb[1].mxu0 }
  0xe1   :  { %v106_v23 = vmax.f32 %v97_v22, 0.0 }
  0xe2   :  { %110 = vst.msk [vmem:[#allocation2 + $0x8] sm:$0xff] %vm108_vm1, %v107_v21 }
  0xe3   :  { %109 = vst.msk [vmem:[#allocation2] sm:$0xff] %vm108_vm1, %v106_v23  ;;  %281 = vmatprep.mubr.msk.f32.mxu1 %vm108_vm1, %v106_v23 }
  0xe4   :  { %282 = vmatmul.mubr.msk.f32.vlgmr.msra.gmra.mrb[0].mxu1 %vm108_vm1, %v107_v21 }
  0xe5   :  { %323 = shalt.err (!%p320_p4)
}
  0xe6   :  { %s324_s19 = scalar_lea.hbm %s462_s3, 256 }
  0xe7   :  { %p325_p5 = scmp.ne.s32.totalorder %s462_s3, %s324_s19  ;;  %p328_p6 = scmp.lt.u32.totalorder %s324_s19, %s462_s3 }
  0xe9   :  { %p330_p7 = pnand %p328_p6, %p325_p5 }
  0xeb   :  { %333 = shalt.err (!%p330_p7)
}
  0xec   :  { %s361_s24 = smov 128   ;;  %s362_s25 = smov 8  }
  0xed   :  { %213 = dma.vmem_to_hbm [thread:$0]  %s208_s16, 256, %s462_s3, [#allocation3], %s361_s24, %s361_s24, %s362_s25  }
  0xee   :  { %s363_s28 = smov [#allocation4]  }
  0xef   :  { %s219_s29 = sshll.u32 %s363_s28, 4  ;;  %s220_s29 = int_to_ptr.vmem [resolvable:$true] %s219_s29 }
  0xf0   :  { %s334_s30 = scalar_lea.vmem %s220_s29, 256  ;;  %p339_p9 = scmp.lt.s32.totalorder %s220_s29, %s220_s29 }
  0xf1   :  { %p335_p8 = scmp.ne.s32.totalorder %s220_s29, %s334_s30  ;;  %p340_p10 = scmp.lt.s32.totalorder %s334_s30, %s334_s30 }
  0xf3   :  { %p341_p11 = por %p340_p10, %p339_p9 }
  0xf5   :  { %p342_p12 = pnand %p341_p11, %p335_p8 }
 0x1b7   :  { %v283_v24 = vpop.f32.mrb[0].mxu1 }
 0x1b8   :  { %201 = vst.msk [vmem:[#allocation4 + $0x8] sm:$0xff] %vm24_vm0, %v283_v24  ;;  %v191_v25 = vpop.f32.mrb[1].mxu1 }
 0x1b9   :  { %200 = vst.msk [vmem:[#allocation4] sm:$0xff] %vm24_vm0, %v191_v25 }
 0x1ba   :  { %345 = shalt.err (!%p342_p12)
}
 0x1bb   :  { %s346_s3 = scalar_lea.hbm %s463_s4, 256 }
 0x1bc   :  { %p347_p13 = scmp.ne.s32.totalorder %s463_s4, %s346_s3  ;;  %p350_p0 = scmp.lt.u32.totalorder %s346_s3, %s463_s4 }
 0x1be   :  { %p352_p1 = pnand %p350_p0, %p347_p13 }
 0x1c0   :  { %355 = shalt.err (!%p352_p1)
}
 0x1c1   :  { %225 = dma.vmem_to_hbm [thread:$0]  %s220_s29, 256, %s463_s4, [#allocation5], %s361_s24, %s361_s24, %s362_s25  }
 0x1c2   :  { %356 = dma.done.wait [#allocation3], 256  }
 0x1c3   :  { %357 = vsyncadd [#allocation3], 4294967040 }
 0x1c4   :  { %358 = dma.done.wait [#allocation5], 256  }
 0x1c5   :  { %359 = vsyncadd [#allocation5], 4294967040 }
 0x1c6   :  { %232 = vsyncpa [#allocation3], 1 }
 0x1c7   :  { %233 = vsyncpa [#allocation5], 1 }

// kernel: tpu_custom_call.1
= control target key start
LH: loop header
LB: loop body
LE: loop exit
PB: predicated region body
PF: predicated region fallthrough
CT: control target
= control target key end

     0   :  { %10 = vsyncpa [#allocation3], 0  ;;  %vm24_vm0 = vcmask 261120   ;;  %s459_s0 = inlined_call_operand.vmem [shape: f32[16,32], index: 0, kind: input, shape index: {}]   ;;  %s460_s1 = inlined_call_operand.vmem [shape: f32[32,64], index: 1, kind: input, shape index: {}]   ;;  %s461_s2 = inlined_call_operand.vmem [shape: f32[64,32], index: 2, kind: input, shape index: {}]   ;;  %s462_s3 = inlined_call_operand.hbm [shape: f32[16,64], index: 3, kind: output, shape index: {0}]   ;;  %s463_s4 = inlined_call_operand.hbm [shape: f32[16,32], index: 4, kind: output, shape index: {1}]  }
   0x1   :  { %v20_v0 = vld [vmem:[%s460_s1] sm:$0xff]  ;;  %v21_v1 = vld [vmem:[%s460_s1 + $0x8] sm:$0xff]  ;;  %v22_v2 = vld [vmem:[%s460_s1 + $0x10] sm:$0xff] }
   0x2   :  { %v284_v3 = vpack.c.bf16 %v21_v1, %v20_v0  ;;  %v23_v4 = vld [vmem:[%s460_s1 + $0x18] sm:$0xff]  ;;  %v18_v5 = vld [vmem:[%s459_s0] sm:$0xff]  ;;  %v112_v8 = vld [vmem:[%s461_s2 + $0x8] sm:$0xff] }
   0x3   :  { %v288_v6 = vpack.c.bf16 %v23_v4, %v22_v2  ;;  %262 = vmatprep.mubr.msk.f32.mxu0 %vm24_vm0, %v18_v5  ;;  %v111_v7 = vld [vmem:[%s461_s2] sm:$0xff]  ;;  %v113_v9 = vld [vmem:[%s461_s2 + $0x10] sm:$0xff]  ;;  %v114_v11 = vld [vmem:[%s461_s2 + $0x18] sm:$0xff] }
   0x4   :  { %285 = vmatprep.subr.bf16.mxu0 %v284_v3  ;;  %v292_v10 = vpack.c.bf16 %v112_v8, %v111_v7  ;;  %v296_v12 = vpack.c.bf16 %v114_v11, %v113_v9  ;;  %v115_v13 = vld [vmem:[%s461_s2 + $0x20] sm:$0xff]  ;;  %v116_v14 = vld [vmem:[%s461_s2 + $0x28] sm:$0xff] }
   0x5   :  { %287 = vmatpush3.bf16.msra.mxu0 %v284_v3 }
   0x6   :  { %11 = vsyncpa [#allocation5], 0  ;;  %289 = vmatprep.subr.bf16.mxu0 %v288_v6  ;;  %293 = vmatprep.subr.bf16.mxu1 %v292_v10  ;;  %v300_v15 = vpack.c.bf16 %v116_v14, %v115_v13  ;;  %v19_v16 = vld [vmem:[%s459_s0 + $0x8] sm:$0xff]  ;;  %v117_v17 = vld [vmem:[%s461_s2 + $0x30] sm:$0xff]  ;;  %vm108_vm1 = vcmask 523264   ;;  %s360_s0 = smov [#allocation2]  }
   0x7   :  { %295 = vmatpush3.bf16.msra.mxu1 %v292_v10  ;;  %v118_v18 = vld [vmem:[%s461_s2 + $0x38] sm:$0xff]  ;;  %s207_s16 = sshll.u32 %s360_s0, 4  ;;  %s208_s16 = int_to_ptr.vmem [resolvable:$true] %s207_s16 }
   0x8   :  { %297 = vmatprep.subr.bf16.mxu1 %v296_v12  ;;  %v304_v19 = vpack.c.bf16 %v118_v18, %v117_v17  ;;  %s312_s17 = scalar_lea.vmem %s208_s16, 256  ;;  %p317_p1 = scmp.lt.s32.totalorder %s208_s16, %s208_s16 }
   0x9   :  { %291 = vmatpush3.bf16.msra.mxu0 %v288_v6  ;;  %p313_p0 = scmp.ne.s32.totalorder %s208_s16, %s312_s17  ;;  %p318_p2 = scmp.lt.s32.totalorder %s312_s17, %s312_s17 }
   0xb   :  { %299 = vmatpush3.bf16.msra.mxu1 %v296_v12  ;;  %p319_p3 = por %p318_p2, %p317_p1 }
   0xc   :  { %263 = vmatmul.mubr.msk.f32.vlgmr.msra.gmra.mrb[0].mxu0 %vm24_vm0, %v19_v16  ;;  %301 = vmatprep.subr.bf16.mxu1 %v300_v15 }
   0xd   :  { %p320_p4 = pnand %p319_p3, %p313_p0 }
   0xf   :  { %303 = vmatpush3.bf16.msra.mxu1 %v300_v15 }
  0x10   :  { %305 = vmatprep.subr.bf16.mxu1 %v304_v19 }
  0x13   :  { %307 = vmatpush3.bf16.msra.mxu1 %v304_v19 }
  0xdf   :  { %v264_v20 = vpop.f32.mrb[0].mxu0 }
  0xe0   :  { %v107_v21 = vmax.f32 %v264_v20, 0.0  ;;  %v97_v22 = vpop.f32.mrb[1].mxu0 }
  0xe1   :  { %v106_v23 = vmax.f32 %v97_v22, 0.0 }
  0xe2   :  { %110 = vst.msk [vmem:[#allocation2 + $0x8] sm:$0xff] %vm108_vm1, %v107_v21 }
  0xe3   :  { %109 = vst.msk [vmem:[#allocation2] sm:$0xff] %vm108_vm1, %v106_v23  ;;  %281 = vmatprep.mubr.msk.f32.mxu1 %vm108_vm1, %v106_v23 }
  0xe4   :  { %282 = vmatmul.mubr.msk.f32.vlgmr.msra.gmra.mrb[0].mxu1 %vm108_vm1, %v107_v21 }
  0xe5   :  { %323 = shalt.err (!%p320_p4)
}
  0xe6   :  { %s324_s19 = scalar_lea.hbm %s462_s3, 256 }
  0xe7   :  { %p325_p5 = scmp.ne.s32.totalorder %s462_s3, %s324_s19  ;;  %p328_p6 = scmp.lt.u32.totalorder %s324_s19, %s462_s3 }
  0xe9   :  { %p330_p7 = pnand %p328_p6, %p325_p5 }
  0xeb   :  { %333 = shalt.err (!%p330_p7)
}
  0xec   :  { %s361_s24 = smov 128   ;;  %s362_s25 = smov 8  }
  0xed   :  { %213 = dma.vmem_to_hbm [thread:$0]  %s208_s16, 256, %s462_s3, [#allocation3], %s361_s24, %s361_s24, %s362_s25  }
  0xee   :  { %s363_s28 = smov [#allocation4]  }
  0xef   :  { %s219_s29 = sshll.u32 %s363_s28, 4  ;;  %s220_s29 = int_to_ptr.vmem [resolvable:$true] %s219_s29 }
  0xf0   :  { %s334_s30 = scalar_lea.vmem %s220_s29, 256  ;;  %p339_p9 = scmp.lt.s32.totalorder %s220_s29, %s220_s29 }
  0xf1   :  { %p335_p8 = scmp.ne.s32.totalorder %s220_s29, %s334_s30  ;;  %p340_p10 = scmp.lt.s32.totalorder %s334_s30, %s334_s30 }
  0xf3   :  { %p341_p11 = por %p340_p10, %p339_p9 }
  0xf5   :  { %p342_p12 = pnand %p341_p11, %p335_p8 }
 0x1b7   :  { %v283_v24 = vpop.f32.mrb[0].mxu1 }
 0x1b8   :  { %201 = vst.msk [vmem:[#allocation4 + $0x8] sm:$0xff] %vm24_vm0, %v283_v24  ;;  %v191_v25 = vpop.f32.mrb[1].mxu1 }
 0x1b9   :  { %200 = vst.msk [vmem:[#allocation4] sm:$0xff] %vm24_vm0, %v191_v25 }
 0x1ba   :  { %345 = shalt.err (!%p342_p12)
}
 0x1bb   :  { %s346_s3 = scalar_lea.hbm %s463_s4, 256 }
 0x1bc   :  { %p347_p13 = scmp.ne.s32.totalorder %s463_s4, %s346_s3  ;;  %p350_p0 = scmp.lt.u32.totalorder %s346_s3, %s463_s4 }
 0x1be   :  { %p352_p1 = pnand %p350_p0, %p347_p13 }
 0x1c0   :  { %355 = shalt.err (!%p352_p1)
}
 0x1c1   :  { %225 = dma.vmem_to_hbm [thread:$0]  %s220_s29, 256, %s463_s4, [#allocation5], %s361_s24, %s361_s24, %s362_s25  }
 0x1c2   :  { %356 = dma.done.wait [#allocation3], 256  }
 0x1c3   :  { %357 = vsyncadd [#allocation3], 4294967040 }
 0x1c4   :  { %358 = dma.done.wait [#allocation5], 256  }
 0x1c5   :  { %359 = vsyncadd [#allocation5], 4294967040 }
 0x1c6   :  { %232 = vsyncpa [#allocation3], 1 }
 0x1c7   :  { %233 = vsyncpa [#allocation5], 1 }

</bundles_post_ra>
